<compile_context>
chip_gen: v7x
topology: tpu7x:2x2x1
jax: 0.10.0
libtpu: 0.0.40
codegen_flags: <defaults>
</compile_context>

<pallas_src>
import jax
import jax.numpy as jnp
from jax.experimental import pallas as pl
from jax.experimental.pallas import tpu as pltpu


_LANE = 128
_TARGET_BLOCK_BYTES = 2 * 1024 * 1024  # ~2 MiB padded input block per grid step


def _transpose_tile_kernel(x_ref, o_ref):
    # x_ref: (nb, tT, tS), o_ref: (nb, tS, tT) — transpose the minor two axes (XLU).
    o_ref[...] = jnp.swapaxes(x_ref[...], 1, 2)


def _round_up(x: int, m: int) -> int:
    return ((x + m - 1) // m) * m


def _tile_target() -> int:
    """Per-axis tile target.

    512-wide tiles already sit at ~85% of the HBM roofline (vs ~86% at 1024);
    only go to 1024 on chips with >= 96 MiB VMEM (v5e/v6e: 128 MiB physical)
    where the bigger double-buffered footprint is free.  v7x (64 MiB VMEM)
    stays at 512 so pipeline buffers/scratch keep headroom.
    """
    try:
        info = pltpu.get_tpu_info()
        if getattr(info, "vmem_capacity_bytes", 0) >= 96 * 1024 * 1024:
            return 1024
    except Exception:
        pass
    return 512


def _pick_tile(dim: int, target: int) -> int:
    # Full extent when it already fits (legal on both the input and the
    # transposed output block via the "== full dim" exception of the (8,128)
    # rule); otherwise a fixed 128-multiple tile — cdiv grid + masked edge
    # blocks handle any remainder, no divisor constraint needed.
    return dim if dim <= target else target


def transpose_time_channel(x):
    """Pallas equivalent of TransposeTimeChannel.forward: x.permute(0, 1, 3, 2)."""
    B, C, T, S = x.shape
    N = B * C
    x2 = x.reshape(N, T, S)

    itemsize = jnp.dtype(x.dtype).itemsize
    target = _tile_target()
    tT = _pick_tile(T, target)
    tS = _pick_tile(S, target)

    # Padded per-leading-slice VMEM footprint of the input tile and of the
    # transposed output tile (sublane tile is 8 for 32-bit, 16 for bf16,
    # 32 for int8; lane tile is 128).  Using padded sizes keeps nb from
    # blowing up VMEM when the last dim is lane-sparse (e.g. S = 8).
    sub = 8 * max(1, 4 // itemsize)
    in_slice_bytes = _round_up(tT, sub) * _round_up(tS, _LANE) * itemsize
    out_slice_bytes = _round_up(tS, sub) * _round_up(tT, _LANE) * itemsize

    # Batch the leading axis into the block when a single (tT, tS) slice is
    # small, so tiny-T/S shapes still get ~MiB-scale DMAs per grid step.
    nb = max(1, min(N, _TARGET_BLOCK_BYTES // max(in_slice_bytes, 1)))

    grid = (pl.cdiv(N, nb), pl.cdiv(T, tT), pl.cdiv(S, tS))

    # Real double-buffered footprint: 2 buffers x (in tile + out tile),
    # plus ~50% headroom for Mosaic's internal transpose scratch.
    footprint = 2 * nb * (in_slice_bytes + out_slice_bytes)
    vmem_limit = int(min(max(3 * footprint // 2, 16 * 1024 * 1024),
                         32 * 1024 * 1024))

    out = pl.pallas_call(
        _transpose_tile_kernel,
        out_shape=jax.ShapeDtypeStruct((N, S, T), x.dtype),
        grid_spec=pltpu.PrefetchScalarGridSpec(
            num_scalar_prefetch=0,
            grid=grid,
            in_specs=[
                pl.BlockSpec((nb, tT, tS), lambda n, i, j: (n, i, j)),
            ],
            # Output tile indices swapped: grid step (n, i, j) writes block (n, j, i).
            out_specs=pl.BlockSpec((nb, tS, tT), lambda n, i, j: (n, j, i)),
        ),
        compiler_params=pltpu.CompilerParams(
            dimension_semantics=("parallel", "parallel", "parallel"),
            vmem_limit_bytes=vmem_limit,
        ),
        cost_estimate=pl.CostEstimate(
            flops=0,
            transcendentals=0,
            bytes_accessed=2 * x.size * itemsize,
        ),
    )(x2)

    return out.reshape(B, C, S, T)


if __name__ == "__main__":
    key = jax.random.PRNGKey(0)

    # Small shape (batched-leading-axis path: T, S << 128, nb == B*C).
    x = jax.random.normal(key, (2, 4, 16, 8), dtype=jnp.float32)
    out = jax.block_until_ready(transpose_time_channel(x))
    ref = jnp.transpose(x, (0, 1, 3, 2))
    assert out.shape == ref.shape, (out.shape, ref.shape)
    assert jnp.array_equal(out, ref), "mismatch vs reference permute (small/batched)"

    # Tiled path with awkward dims: T = 1200 exercises a partial cdiv edge
    # block along T, S = 128 is lane-exact, and N = 10 with nb > 1 exercises a
    # partial leading block — all the new masked-remainder paths.
    x_big = jax.random.normal(jax.random.PRNGKey(1), (2, 5, 1200, 128), dtype=jnp.float32)
    out_big = jax.block_until_ready(transpose_time_channel(x_big))
    ref_big = jnp.transpose(x_big, (0, 1, 3, 2))
    assert out_big.shape == ref_big.shape, (out_big.shape, ref_big.shape)
    assert jnp.array_equal(out_big, ref_big), "mismatch vs reference permute (tiled/edge)"

    print("KERNEL_OK")
</pallas_src>

<mosaic_0001>
module attributes {stable_mosaic.version = 11 : i64} {
  func.func @_transpose_tile_kernel(%arg0: i32, %arg1: i32, %arg2: i32, %arg3: memref<8x16x8xf32, #tpu.memory_space<vmem>>, %arg4: memref<8x8x16xf32, #tpu.memory_space<vmem>>) attributes {dimension_semantics = [#tpu.dimension_semantics<parallel>, #tpu.dimension_semantics<parallel>, #tpu.dimension_semantics<parallel>], iteration_bounds = array<i64: 1, 1, 1>, scalar_prefetch = 0 : i64, scratch_operands = 0 : i64, tpu.core_type = #tpu.core_type<tc>, window_params = [{transform_indices = @transform_0, window_bounds = array<i64: 8, 16, 8>}, {transform_indices = @transform_1, window_bounds = array<i64: 8, 8, 16>}]} {
    %c0 = arith.constant 0 : index
    %c0_0 = arith.constant 0 : index
    %c0_1 = arith.constant 0 : index
    %0 = vector.load %arg3[%c0, %c0_0, %c0_1] : memref<8x16x8xf32, #tpu.memory_space<vmem>>, vector<8x16x8xf32>
    %1 = tpu.transpose %0, [0, 2, 1] : vector<8x16x8xf32> -> vector<8x8x16xf32>
    %c0_2 = arith.constant 0 : index
    %c0_3 = arith.constant 0 : index
    %c0_4 = arith.constant 0 : index
    %2 = vector.load %arg4[%c0_2, %c0_3, %c0_4] : memref<8x8x16xf32, #tpu.memory_space<vmem>>, vector<8x8x16xf32>
    tpu.vector_store %arg4[%c0_2, %c0_3, %c0_4], %1 {strides = array<i32>} : memref<8x8x16xf32, #tpu.memory_space<vmem>>, vector<8x8x16xf32>,
    return
  }
  func.func @transform_0(%arg0: i32, %arg1: i32, %arg2: i32) -> (i32, i32, i32) {
    %c0_i32 = arith.constant 0 : i32
    return %arg0, %arg1, %arg2 : i32, i32, i32
  }
  func.func @transform_1(%arg0: i32, %arg1: i32, %arg2: i32) -> (i32, i32, i32) {
    %c0_i32 = arith.constant 0 : i32
    return %arg0, %arg2, %arg1 : i32, i32, i32
  }
}

</mosaic_0001>

<bundles_post_ra>
// kernel: tpu_custom_call.1
= control target key start
LH: loop header
LB: loop body
LE: loop exit
PB: predicated region body
PF: predicated region fallthrough
CT: control target
= control target key end

     0   :  { %s415_s0 = inlined_call_operand.vmem [shape: f32[8,16,8], index: 0, kind: input, shape index: {}]   ;;  %s416_s1 = inlined_call_operand.hbm [shape: f32[8,8,16], index: 1, kind: output, shape index: {}]  }
   0x1   :  { %v11_v0 = vld [vmem:[%s415_s0 + $0x10] sm:$0xff]  ;;  %v9_v1 = vld [vmem:[%s415_s0] sm:$0xff]  ;;  %v12_v2 = vld [vmem:[%s415_s0 + $0x18] sm:$0xff] }
   0x2   :  { %57 = vxpose.xlu1.b32.start [1/2] (short) (narrow) %v11_v0, 8  ;;  %25 = vxpose.xlu0.b32.start [1/2] (short) (narrow) %v9_v1, 8  ;;  %v10_v3 = vld [vmem:[%s415_s0 + $0x8] sm:$0xff] }
   0x6   :  { %58 = vxpose.xlu1.b32.end [2/2] (short) (narrow) %v12_v2, 8  ;;  %26 = vxpose.xlu0.b32.end [2/2] (short) (narrow) %v10_v3, 8 }
   0x7   :  { %6 = vsyncpa [#allocation3], 0  ;;  %v15_v4 = vld [vmem:[%s415_s0 + $0x30] sm:$0xff]  ;;  %v13_v5 = vld [vmem:[%s415_s0 + $0x20] sm:$0xff]  ;;  %vm281_vm0 = vcmask 130048  }
   0x8   :  { %v16_v6 = vld [vmem:[%s415_s0 + $0x38] sm:$0xff]  ;;  %v14_v7 = vld [vmem:[%s415_s0 + $0x28] sm:$0xff]  ;;  %v19_v8 = vld [vmem:[%s415_s0 + $0x50] sm:$0xff] }
   0x9   :  { %v17_v9 = vld [vmem:[%s415_s0 + $0x40] sm:$0xff]  ;;  %v20_v10 = vld [vmem:[%s415_s0 + $0x58] sm:$0xff]  ;;  %v18_v11 = vld [vmem:[%s415_s0 + $0x48] sm:$0xff] }
   0xa   :  { %121 = vxpose.xlu1.b32.start [1/2] (short) (narrow) %v15_v4, 8  ;;  %89 = vxpose.xlu0.b32.start [1/2] (short) (narrow) %v13_v5, 8  ;;  %v23_v12 = vld [vmem:[%s415_s0 + $0x70] sm:$0xff]  ;;  %v21_v13 = vld [vmem:[%s415_s0 + $0x60] sm:$0xff]  ;;  %v24_v14 = vld [vmem:[%s415_s0 + $0x78] sm:$0xff] }
   0xb   :  { %v22_v15 = vld [vmem:[%s415_s0 + $0x68] sm:$0xff]  ;;  %s334_s0 = smov [#allocation2]  }
   0xc   :  { %s295_s9 = sshll.u32 %s334_s0, 4  ;;  %s296_s9 = int_to_ptr.vmem [resolvable:$true] %s295_s9 }
   0xd   :  { %s310_s10 = scalar_lea.vmem %s296_s9, 1024  ;;  %p315_p1 = scmp.lt.s32.totalorder %s296_s9, %s296_s9 }
   0xe   :  { %122 = vxpose.xlu1.b32.end [2/2] (short) (narrow) %v16_v6, 8  ;;  %90 = vxpose.xlu0.b32.end [2/2] (short) (narrow) %v14_v7, 8  ;;  %p311_p0 = scmp.ne.s32.totalorder %s296_s9, %s310_s10  ;;  %p316_p2 = scmp.lt.s32.totalorder %s310_s10, %s310_s10 }
  0x10   :  { %p317_p3 = por %p316_p2, %p315_p1 }
  0x12   :  { %185 = vxpose.xlu1.b32.start [1/2] (short) (narrow) %v19_v8, 8  ;;  %153 = vxpose.xlu0.b32.start [1/2] (short) (narrow) %v17_v9, 8  ;;  %p318_p4 = pnand %p317_p3, %p311_p0 }
  0x16   :  { %186 = vxpose.xlu1.b32.end [2/2] (short) (narrow) %v20_v10, 8  ;;  %154 = vxpose.xlu0.b32.end [2/2] (short) (narrow) %v18_v11, 8 }
  0x1a   :  { %249 = vxpose.xlu1.b32.start [1/2] (short) (narrow) %v23_v12, 8  ;;  %217 = vxpose.xlu0.b32.start [1/2] (short) (narrow) %v21_v13, 8 }
  0x1e   :  { %250 = vxpose.xlu1.b32.end [2/2] (short) (narrow) %v24_v14, 8  ;;  %218 = vxpose.xlu0.b32.end [2/2] (short) (narrow) %v22_v15, 8 }
  0x82   :  { %v73_v16 = vpop.trf.xlu1  ;;  %v41_v17 = vpop.trf.xlu0 }
  0x83   :  { %283 = vst.msk [vmem:[#allocation2 + $0x8] sm:$0xff] %vm281_vm0, %v73_v16  ;;  %282 = vst.msk [vmem:[#allocation2] sm:$0xff] %vm281_vm0, %v41_v17 }
  0x8a   :  { %v137_v18 = vpop.trf.xlu1  ;;  %v105_v19 = vpop.trf.xlu0 }
  0x8b   :  { %285 = vst.msk [vmem:[#allocation2 + $0x18] sm:$0xff] %vm281_vm0, %v137_v18  ;;  %284 = vst.msk [vmem:[#allocation2 + $0x10] sm:$0xff] %vm281_vm0, %v105_v19 }
  0x92   :  { %v201_v20 = vpop.trf.xlu1  ;;  %v169_v21 = vpop.trf.xlu0 }
  0x93   :  { %287 = vst.msk [vmem:[#allocation2 + $0x28] sm:$0xff] %vm281_vm0, %v201_v20  ;;  %286 = vst.msk [vmem:[#allocation2 + $0x20] sm:$0xff] %vm281_vm0, %v169_v21 }
  0x9a   :  { %v265_v22 = vpop.trf.xlu1  ;;  %v233_v23 = vpop.trf.xlu0 }
  0x9b   :  { %289 = vst.msk [vmem:[#allocation2 + $0x38] sm:$0xff] %vm281_vm0, %v265_v22  ;;  %288 = vst.msk [vmem:[#allocation2 + $0x30] sm:$0xff] %vm281_vm0, %v233_v23 }
  0x9c   :  { %321 = shalt.err (!%p318_p4)
}
  0x9d   :  { %s322_s13 = scalar_lea.hbm %s416_s1, 1024 }
  0x9e   :  { %p323_p5 = scmp.ne.s32.totalorder %s416_s1, %s322_s13  ;;  %p326_p6 = scmp.lt.u32.totalorder %s322_s13, %s416_s1 }
  0xa0   :  { %p328_p7 = pnand %p326_p6, %p323_p5 }
  0xa2   :  { %331 = shalt.err (!%p328_p7)
}
  0xa3   :  { %s335_s18 = smov 128   ;;  %s336_s19 = smov 8  }
  0xa4   :  { %301 = dma.vmem_to_hbm [thread:$0]  %s296_s9, 1024, %s416_s1, [#allocation3], %s335_s18, %s335_s18, %s336_s19  }
  0xa5   :  { %332 = dma.done.wait [#allocation3], 1024  }
  0xa6   :  { %333 = vsyncadd [#allocation3], 4294966272 }
  0xa7   :  { %305 = vsyncpa [#allocation3], 1 }

</bundles_post_ra>
